<compile_context>
chip_gen: v7x
topology: tpu7x:2x2x1
jax: 0.10.0
libtpu: 0.0.40
codegen_flags: <defaults>
</compile_context>

<pallas_src>
import jax
import jax.numpy as jnp
from jax import lax
from jax.experimental import pallas as pl
from jax.experimental.pallas import tpu as pltpu

LN_EPS = 1e-5  # nn.LayerNorm default


# ---------------------------------------------------------------------------
# Kernel A: weight resident (tk == D). One grid axis over row tiles.
# ---------------------------------------------------------------------------
def basic_block_kernel(x_ref, w_ref, params_ref, o_ref):
    x = x_ref[...]                                    # [tb, D] native dtype (MXU feed)
    w = w_ref[...]                                    # [D, D] pre-transposed (in, out)
    params = params_ref[...].astype(jnp.float32)      # [3, D] = bias / gamma / beta
    bias, gamma, beta = params[0:1, :], params[1:2, :], params[2:3, :]

    # Linear: y = x @ W_t + b  (MXU, f32 accumulation; no in-kernel transpose/upcast)
    y = jnp.dot(x, w, preferred_element_type=jnp.float32) + bias

    # LayerNorm over the feature dim (f32 math; rsqrt stays on the EUP)
    mean = jnp.mean(y, axis=-1, keepdims=True)
    diff = y - mean
    var = jnp.mean(diff * diff, axis=-1, keepdims=True)
    y = diff * lax.rsqrt(var + LN_EPS) * gamma + beta

    # ReLU -> dropout (identity, eval) -> residual add
    out = jnp.maximum(y, 0.0) + x.astype(jnp.float32)
    o_ref[...] = out.astype(o_ref.dtype)


# ---------------------------------------------------------------------------
# Kernel B: K-streamed weight (tk < D) for large D / v7x VMEM budget.
# Grid = (row tiles [parallel], K slabs [arbitrary]); full-D f32 accumulator scratch.
# ---------------------------------------------------------------------------
def basic_block_kstream_kernel(xk_ref, w_ref, params_ref, xres_ref, o_ref, acc_ref):
    k = pl.program_id(1)

    @pl.when(k == 0)
    def _():
        acc_ref[...] = jnp.zeros_like(acc_ref)

    # Partial matmul: [tb, tk] @ [tk, D] accumulated in f32.
    acc_ref[...] += jnp.dot(xk_ref[...], w_ref[...],
                            preferred_element_type=jnp.float32)

    @pl.when(k == pl.num_programs(1) - 1)
    def _():
        params = params_ref[...].astype(jnp.float32)
        bias, gamma, beta = params[0:1, :], params[1:2, :], params[2:3, :]

        y = acc_ref[...] + bias
        mean = jnp.mean(y, axis=-1, keepdims=True)
        diff = y - mean
        var = jnp.mean(diff * diff, axis=-1, keepdims=True)
        y = diff * lax.rsqrt(var + LN_EPS) * gamma + beta

        out = jnp.maximum(y, 0.0) + xres_ref[...].astype(jnp.float32)
        o_ref[...] = out.astype(o_ref.dtype)


# ---------------------------------------------------------------------------
# Wrapper
# ---------------------------------------------------------------------------
def basic_block(x, weight, bias, gamma, beta, *, tb=None, tk=None):
    """x: [B, D]; weight: [D, D] (PyTorch layout, [out, in]); bias/gamma/beta: [D]."""
    B, D = x.shape
    assert weight.shape == (D, D)

    # Pre-transpose once at trace time (outside the kernel loop): [D_in, D_out].
    w_t = weight.T
    # Fuse bias / LN-gamma / LN-beta into one slab -> one BlockSpec, one DMA.
    params = jnp.stack([bias, gamma, beta], axis=0)   # (3, D)

    # --- row tiling: multiple of 8 sublanes; 256-1024 rows for large B so the
    #     pipeline has multiple steps (DMA/compute overlap, megacore sharding). ---
    if tb is None:
        tb = B
        if B > 512:
            for cand in (512, 256, 1024, 128, 64, 32, 16, 8):
                if B % cand == 0:
                    tb = cand
                    break
    assert B % tb == 0 and (tb % 8 == 0 or tb == B)

    # --- K tiling: stream (tk, D) weight slabs only when the full DxD weight,
    #     double-buffered, would stress VMEM (v7x has 64 MiB total / 32 MiB scoped). ---
    if tk is None:
        w_bytes = D * D * weight.dtype.itemsize
        tk = D
        if 2 * w_bytes > (24 << 20):
            for cand in (512, 256, 128):
                if D % cand == 0:
                    tk = cand
                    break
    assert D % tk == 0

    if tk == D:
        # Weight stays resident; single pass over row tiles.
        return pl.pallas_call(
            basic_block_kernel,
            out_shape=jax.ShapeDtypeStruct((B, D), x.dtype),
            grid_spec=pltpu.PrefetchScalarGridSpec(
                num_scalar_prefetch=0,
                grid=(B // tb,),
                in_specs=[
                    pl.BlockSpec((tb, D), lambda i: (i, 0)),   # x row tile
                    pl.BlockSpec((D, D), lambda i: (0, 0)),    # weight (resident)
                    pl.BlockSpec((3, D), lambda i: (0, 0)),    # fused bias/gamma/beta
                ],
                out_specs=pl.BlockSpec((tb, D), lambda i: (i, 0)),
            ),
            compiler_params=pltpu.CompilerParams(
                dimension_semantics=("parallel",),
                vmem_limit_bytes=64 << 20,
            ),
        )(x, w_t, params)

    # K-streamed path for large D.
    return pl.pallas_call(
        basic_block_kstream_kernel,
        out_shape=jax.ShapeDtypeStruct((B, D), x.dtype),
        grid_spec=pltpu.PrefetchScalarGridSpec(
            num_scalar_prefetch=0,
            grid=(B // tb, D // tk),
            in_specs=[
                pl.BlockSpec((tb, tk), lambda i, k: (i, k)),   # x slab for matmul
                pl.BlockSpec((tk, D), lambda i, k: (k, 0)),    # weight slab (streamed)
                pl.BlockSpec((3, D), lambda i, k: (0, 0)),     # fused bias/gamma/beta
                pl.BlockSpec((tb, D), lambda i, k: (i, 0)),    # full-D rows for residual
            ],
            out_specs=pl.BlockSpec((tb, D), lambda i, k: (i, 0)),
            scratch_shapes=[pltpu.VMEM((tb, D), jnp.float32)],
        ),
        compiler_params=pltpu.CompilerParams(
            dimension_semantics=("parallel", "arbitrary"),
            vmem_limit_bytes=64 << 20,
        ),
    )(x, w_t, params, x)


def basic_block_ref(x, weight, bias, gamma, beta):
    y = x @ weight.T + bias
    mean = jnp.mean(y, axis=-1, keepdims=True)
    var = jnp.mean((y - mean) ** 2, axis=-1, keepdims=True)
    y = (y - mean) / jnp.sqrt(var + LN_EPS) * gamma + beta
    return jnp.maximum(y, 0.0) + x


if __name__ == "__main__":
    # --- Test 1: toy module size (batch=8, dX=32), weight-resident path ---
    B, D = 8, 32
    kx, kw, kb = jax.random.split(jax.random.PRNGKey(0), 3)
    x = jax.random.normal(kx, (B, D), dtype=jnp.float32)
    bound = 1.0 / float(D) ** 0.5                       # mimic nn.Linear uniform init scale
    weight = jax.random.uniform(kw, (D, D), jnp.float32, -bound, bound)
    bias = jax.random.uniform(kb, (D,), jnp.float32, -bound, bound)
    gamma = jnp.ones((D,), jnp.float32)                 # nn.LayerNorm default weight
    beta = jnp.zeros((D,), jnp.float32)                 # nn.LayerNorm default bias

    out = jax.block_until_ready(basic_block(x, weight, bias, gamma, beta))
    ref = basic_block_ref(x, weight, bias, gamma, beta)
    assert out.shape == (B, D)
    assert jnp.allclose(out, ref, atol=1e-4, rtol=1e-4), "mismatch (resident path)"

    # --- Test 2: exercise the K-streamed weight path (used for large D / v7x) ---
    B2, D2 = 16, 256
    k2x, k2w, k2b = jax.random.split(jax.random.PRNGKey(1), 3)
    x2 = jax.random.normal(k2x, (B2, D2), dtype=jnp.float32)
    bound2 = 1.0 / float(D2) ** 0.5
    w2 = jax.random.uniform(k2w, (D2, D2), jnp.float32, -bound2, bound2)
    b2 = jax.random.uniform(k2b, (D2,), jnp.float32, -bound2, bound2)
    g2 = jnp.ones((D2,), jnp.float32)
    be2 = jnp.zeros((D2,), jnp.float32)

    out2 = jax.block_until_ready(basic_block(x2, w2, b2, g2, be2, tk=128))
    ref2 = basic_block_ref(x2, w2, b2, g2, be2)
    assert jnp.allclose(out2, ref2, atol=1e-4, rtol=1e-4), "mismatch (K-streamed path)"

    print("KERNEL_OK")
</pallas_src>

<mosaic_0001>
module attributes {stable_mosaic.version = 11 : i64} {
  func.func @basic_block_kernel(%arg0: i32, %arg1: memref<8x32xf32, #tpu.memory_space<vmem>>, %arg2: memref<32x32xf32, #tpu.memory_space<vmem>>, %arg3: memref<3x32xf32, #tpu.memory_space<vmem>>, %arg4: memref<8x32xf32, #tpu.memory_space<vmem>>) attributes {dimension_semantics = [#tpu.dimension_semantics<parallel>], iteration_bounds = array<i64: 1>, scalar_prefetch = 0 : i64, scratch_operands = 0 : i64, tpu.core_type = #tpu.core_type<tc>, window_params = [{transform_indices = @transform_0, window_bounds = array<i64: 8, 32>}, {pipeline_mode = #tpu.pipeline_mode<synchronous>, transform_indices = @transform_1, window_bounds = array<i64: 32, 32>}, {pipeline_mode = #tpu.pipeline_mode<synchronous>, transform_indices = @transform_2, window_bounds = array<i64: 3, 32>}, {transform_indices = @transform_3, window_bounds = array<i64: 8, 32>}]} {
    %c0 = arith.constant 0 : index
    %c0_0 = arith.constant 0 : index
    %0 = vector.load %arg1[%c0, %c0_0] : memref<8x32xf32, #tpu.memory_space<vmem>>, vector<8x32xf32>
    %c0_1 = arith.constant 0 : index
    %c0_2 = arith.constant 0 : index
    %1 = vector.load %arg2[%c0_1, %c0_2] : memref<32x32xf32, #tpu.memory_space<vmem>>, vector<32x32xf32>
    %c0_3 = arith.constant 0 : index
    %c0_4 = arith.constant 0 : index
    %2 = vector.load %arg3[%c0_3, %c0_4] : memref<3x32xf32, #tpu.memory_space<vmem>>, vector<3x32xf32>
    %3 = vector.extract_strided_slice %2 {offsets = [0, 0], sizes = [1, 32], strides = [1, 1]} : vector<3x32xf32> to vector<1x32xf32>
    %4 = vector.extract_strided_slice %2 {offsets = [1, 0], sizes = [1, 32], strides = [1, 1]} : vector<3x32xf32> to vector<1x32xf32>
    %5 = vector.extract_strided_slice %2 {offsets = [2, 0], sizes = [1, 32], strides = [1, 1]} : vector<3x32xf32> to vector<1x32xf32>
    %cst = arith.constant dense<0.000000e+00> : vector<8x32xf32>
    %6 = tpu.matmul %0, %1, %cst {dimension_numbers = #tpu.dot_dimension_numbers<[1], [0], [0], [1], [0, 0, 1, 1], [], []>} : vector<8x32xf32>, vector<32x32xf32>, vector<8x32xf32> -> vector<8x32xf32>
    %7 = vector.broadcast %3 : vector<1x32xf32> to vector<8x32xf32>
    %8 = arith.addf %6, %7 : vector<8x32xf32>
    %cst_5 = arith.constant dense<0.000000e+00> : vector<8xf32>
    %9 = vector.multi_reduction <add>, %8, %cst_5 [1] : vector<8x32xf32> to vector<8xf32>
    %10 = vector.shape_cast %9 : vector<8xf32> to vector<8x1xf32>
    %cst_6 = arith.constant 3.200000e+01 : f32
    %11 = vector.broadcast %cst_6 : f32 to vector<8x1xf32>
    %12 = arith.divf %10, %11 : vector<8x1xf32>
    %13 = vector.broadcast %12 : vector<8x1xf32> to vector<8x32xf32>
    %14 = arith.subf %8, %13 : vector<8x32xf32>
    %15 = arith.mulf %14, %14 : vector<8x32xf32>
    %cst_7 = arith.constant dense<0.000000e+00> : vector<8xf32>
    %16 = vector.multi_reduction <add>, %15, %cst_7 [1] : vector<8x32xf32> to vector<8xf32>
    %17 = vector.shape_cast %16 : vector<8xf32> to vector<8x1xf32>
    %cst_8 = arith.constant 3.200000e+01 : f32
    %18 = vector.broadcast %cst_8 : f32 to vector<8x1xf32>
    %19 = arith.divf %17, %18 : vector<8x1xf32>
    %cst_9 = arith.constant 9.99999974E-6 : f32
    %20 = vector.broadcast %cst_9 : f32 to vector<8x1xf32>
    %21 = arith.addf %19, %20 : vector<8x1xf32>
    %22 = math.rsqrt %21 : vector<8x1xf32>
    %23 = vector.broadcast %22 : vector<8x1xf32> to vector<8x32xf32>
    %24 = arith.mulf %14, %23 : vector<8x32xf32>
    %25 = vector.broadcast %4 : vector<1x32xf32> to vector<8x32xf32>
    %26 = arith.mulf %24, %25 : vector<8x32xf32>
    %27 = vector.broadcast %5 : vector<1x32xf32> to vector<8x32xf32>
    %28 = arith.addf %26, %27 : vector<8x32xf32>
    %cst_10 = arith.constant 0.000000e+00 : f32
    %29 = vector.broadcast %cst_10 : f32 to vector<8x32xf32>
    %30 = arith.maximumf %28, %29 : vector<8x32xf32>
    %31 = arith.addf %30, %0 : vector<8x32xf32>
    %c0_11 = arith.constant 0 : index
    %c0_12 = arith.constant 0 : index
    %32 = vector.load %arg4[%c0_11, %c0_12] : memref<8x32xf32, #tpu.memory_space<vmem>>, vector<8x32xf32>
    tpu.vector_store %arg4[%c0_11, %c0_12], %31 {strides = array<i32>} : memref<8x32xf32, #tpu.memory_space<vmem>>, vector<8x32xf32>,
    return
  }
  func.func @transform_0(%arg0: i32) -> (i32, i32) {
    %c0_i32 = arith.constant 0 : i32
    %c0_i32_0 = arith.constant 0 : i32
    return %arg0, %c0_i32 : i32, i32
  }
  func.func @transform_1(%arg0: i32) -> (i32, i32) {
    %c0_i32 = arith.constant 0 : i32
    %c0_i32_0 = arith.constant 0 : i32
    %c0_i32_1 = arith.constant 0 : i32
    return %c0_i32, %c0_i32_0 : i32, i32
  }
  func.func @transform_2(%arg0: i32) -> (i32, i32) {
    %c0_i32 = arith.constant 0 : i32
    %c0_i32_0 = arith.constant 0 : i32
    %c0_i32_1 = arith.constant 0 : i32
    return %c0_i32, %c0_i32_0 : i32, i32
  }
  func.func @transform_3(%arg0: i32) -> (i32, i32) {
    %c0_i32 = arith.constant 0 : i32
    %c0_i32_0 = arith.constant 0 : i32
    return %arg0, %c0_i32 : i32, i32
  }
}

</mosaic_0001>

<bundles_post_ra>
// kernel: tpu_custom_call.1
= control target key start
LH: loop header
LB: loop body
LE: loop exit
PB: predicated region body
PF: predicated region fallthrough
CT: control target
= control target key end

     0   :  { %8 = vsyncpa [#allocation3], 0  ;;  %s388_s0 = inlined_call_operand.hbm [shape: f32[8,32], index: 0, kind: input, shape index: {}]   ;;  %s389_s1 = inlined_call_operand.hbm [shape: f32[32,32], index: 1, kind: input, shape index: {}]   ;;  %s390_s2 = inlined_call_operand.hbm [shape: f32[3,32], index: 2, kind: input, shape index: {}]   ;;  %s391_s3 = inlined_call_operand.hbm [shape: f32[8,32], index: 3, kind: output, shape index: {}]  }
   0x1   :  { %9 = vsyncpa [#allocation6], 0 }
   0x2   :  { %10 = vsyncpa [#allocation4], 0  ;;  %s307_s12 = smov [#allocation5]   ;;  %s213_s16 = scalar_lea.hbm %s389_s1, 512 }
   0x3   :  { %s26_s13 = sshll.u32 %s307_s12, 4  ;;  %p214_p0 = scmp.ne.s32.totalorder %s389_s1, %s213_s16  ;;  %s27_s13 = int_to_ptr.vmem [resolvable:$true] %s26_s13 }
   0x4   :  { %p217_p1 = scmp.lt.u32.totalorder %s213_s16, %s389_s1 }
   0x6   :  { %p219_p2 = pnand %p217_p1, %p214_p0 }
   0x8   :  { %222 = shalt.err (!%p219_p2)
}
   0x9   :  { %s223_s21 = scalar_lea.vmem %s27_s13, 512  ;;  %p228_p4 = scmp.lt.s32.totalorder %s27_s13, %s27_s13 }
   0xa   :  { %p224_p3 = scmp.ne.s32.totalorder %s27_s13, %s223_s21  ;;  %p229_p5 = scmp.lt.s32.totalorder %s223_s21, %s223_s21 }
   0xc   :  { %p230_p6 = por %p229_p5, %p228_p4 }
   0xe   :  { %p231_p7 = pnand %p230_p6, %p224_p3 }
  0x10   :  { %234 = shalt.err (!%p231_p7)
}
  0x11   :  { %s308_s22 = smov 128   ;;  %s309_s23 = smov 8  }
  0x12   :  { %32 = dma.hbm_to_vmem [thread:$0]  %s389_s1, 512, %s27_s13, [#allocation6], %s308_s22, %s308_s22, %s309_s23  }
  0x13   :  { %s310_s26 = smov [#allocation2]   ;;  %s311_s28 = smov [#allocation7]  }
  0x14   :  { %s17_s27 = sshll.u32 %s310_s26, 4  ;;  %s39_s29 = sshll.u32 %s311_s28, 4  ;;  %s18_s27 = int_to_ptr.vmem [resolvable:$true] %s17_s27  ;;  %s40_s29 = int_to_ptr.vmem [resolvable:$true] %s39_s29 }
  0x15   :  { %s235_s5 = scalar_lea.hbm %s388_s0, 128 }
  0x16   :  { %p236_p8 = scmp.ne.s32.totalorder %s388_s0, %s235_s5  ;;  %p239_p9 = scmp.lt.u32.totalorder %s235_s5, %s388_s0 }
  0x18   :  { %p241_p10 = pnand %p239_p9, %p236_p8 }
  0x1a   :  { %244 = shalt.err (!%p241_p10)
}
  0x1b   :  { %s245_s1 = scalar_lea.vmem %s18_s27, 128  ;;  %p250_p12 = scmp.lt.s32.totalorder %s18_s27, %s18_s27 }
  0x1c   :  { %p246_p11 = scmp.ne.s32.totalorder %s18_s27, %s245_s1  ;;  %p251_p13 = scmp.lt.s32.totalorder %s245_s1, %s245_s1 }
  0x1e   :  { %p252_p0 = por %p251_p13, %p250_p12 }
  0x20   :  { %p253_p1 = pnand %p252_p0, %p246_p11 }
  0x22   :  { %256 = shalt.err (!%p253_p1)
}
  0x23   :  { %20 = dma.hbm_to_vmem [thread:$0]  %s388_s0, 128, %s18_s27, [#allocation3]  }
  0x24   :  { %s257_s14 = scalar_lea.hbm %s390_s2, 64 }
  0x25   :  { %p258_p2 = scmp.ne.s32.totalorder %s390_s2, %s257_s14  ;;  %p261_p3 = scmp.lt.u32.totalorder %s257_s14, %s390_s2 }
  0x27   :  { %p263_p4 = pnand %p261_p3, %p258_p2 }
  0x29   :  { %266 = shalt.err (!%p263_p4)
}
  0x2a   :  { %s267_s19 = scalar_lea.vmem %s40_s29, 64  ;;  %p272_p6 = scmp.lt.s32.totalorder %s40_s29, %s40_s29 }
  0x2b   :  { %p268_p5 = scmp.ne.s32.totalorder %s40_s29, %s267_s19  ;;  %p273_p7 = scmp.lt.s32.totalorder %s267_s19, %s267_s19 }
  0x2d   :  { %p274_p8 = por %p273_p7, %p272_p6 }
  0x2f   :  { %p275_p9 = pnand %p274_p8, %p268_p5 }
  0x31   :  { %278 = shalt.err (!%p275_p9)
}
  0x32   :  { %42 = dma.hbm_to_vmem [thread:$0]  %s390_s2, 64, %s40_s29, [#allocation6]  }
  0x33   :  { %301 = dma.done.wait [#allocation3], 128  }
  0x34   :  { %302 = vsyncadd [#allocation3], 4294967168 }
  0x35   :  { %303 = dma.done.wait [#allocation6], 576  }
  0x36   :  { %304 = vsyncadd [#allocation6], 4294966720  ;;  %v312_v0 = vmov 0.0|0.0   ;;  %vm313_vm0 = vmmov 0   ;;  %v314_v1 = vmov 0.0   ;;  %v53_v2 = vld [vmem:[#allocation5] sm:$0xff]  ;;  %v58_v9 = vlaneseq }
  0x37   :  { %196 = vmatprep.subr.bf16.mxu0 %v312_v0  ;;  %193 = vmatprep.mubr.msk.f32.mxu0 %vm313_vm0, %v314_v1  ;;  %v54_v3 = vld [vmem:[#allocation5 + $0x8] sm:$0xff]  ;;  %v55_v4 = vld [vmem:[#allocation5 + $0x10] sm:$0xff]  ;;  %v56_v6 = vld [vmem:[#allocation5 + $0x18] sm:$0xff]  ;;  %vm62_vm1 = vcmask 261120   ;;  %s315_s2 = smov [#allocation8]  }
  0x38   :  { %v197_v5 = vpack.c.bf16 %v54_v3, %v53_v2  ;;  %v200_v7 = vpack.c.bf16 %v56_v6, %v55_v4  ;;  %v52_v8 = vld [vmem:[#allocation2] sm:$0xff]  ;;  %v59_v10 = vshrl.u32 %v58_v9, 7  ;;  %v57_v12 = vld [vmem:[#allocation7] sm:$0x7]  ;;  %s169_s21 = sshll.u32 %s315_s2, 4  ;;  %s170_s21 = int_to_ptr.vmem [resolvable:$true] %s169_s21 }
  0x39   :  { %s279_s22 = scalar_lea.vmem %s170_s21, 128  ;;  %p284_p11 = scmp.lt.s32.totalorder %s170_s21, %s170_s21 }
  0x3a   :  { %198 = vmatpush3.bf16.msra.mxu0 %v197_v5  ;;  %v60_v11 = vsub.s32 0, %v59_v10  ;;  %v152_v26 = vsub.s32 1, %v59_v10  ;;  %v157_v27 = vsub.s32 2, %v59_v10  ;;  %p280_p10 = scmp.ne.s32.totalorder %s170_s21, %s279_s22  ;;  %p285_p12 = scmp.lt.s32.totalorder %s279_s22, %s279_s22 }
  0x3b   :  { %199 = vmatprep.subr.bf16.mxu0 %v312_v0 }
  0x3c   :  { %v61_v13 = vrot.slane %v57_v12, %v60_v11  ;;  %v153_v28 = vrot.slane %v57_v12, %v152_v26  ;;  %v158_v30 = vrot.slane %v57_v12, %v157_v27  ;;  %p286_p13 = por %p285_p12, %p284_p11 }
  0x3e   :  { %201 = vmatpush3.bf16.msra.mxu0 %v200_v7  ;;  %p287_p0 = pnand %p286_p13, %p280_p10 }
  0x41   :  { %194 = vmatmul.mubr.msk.f32.vlgmr.msra.gmra.mrb[0].mxu0 %vm62_vm1, %v52_v8 }
 0x114   :  { %v132_v14 = vpop.f32.mrb[0].mxu0 }
 0x115   :  { %v133_v15 = vadd.f32 %v132_v14, %v61_v13  ;;  %v195_v16 = vpop.f32.mrb[1].mxu0 }
 0x117   :  { %v136_v17 = vsel %vm62_vm1, %v133_v15, 0.0 }
 0x118   :  { %137 = vadd.xlane.f32.xlu0 %v136_v17 }
 0x1a5   :  { %v138_v18 = vpop.xlane.xlu0 %137 }
 0x1a6   :  { %v140_v19 = vmul.f32 0.03125, %v138_v18 }
 0x1a8   :  { %v141_v20 = vsub.f32 %v133_v15, %v140_v19 }
 0x1aa   :  { %v142_v21 = vmul.f32 %v141_v20, %v141_v20 }
 0x1ac   :  { %v143_v22 = vsel %vm62_vm1, %v142_v21, 0.0 }
 0x1ad   :  { %144 = vadd.xlane.f32.xlu0 %v143_v22 }
 0x23a   :  { %v145_v23 = vpop.xlane.xlu0 %144 }
 0x23b   :  { %v146_v24 = vmul.f32 0.03125, %v145_v23 }
 0x23d   :  { %v147_v25 = vadd.f32 1e-05, %v146_v24 }
 0x23f   :  { %211 = vrsqrt.f32 %v147_v25 }
 0x249   :  { %v212_v29 = vpop.eup %211 }
 0x24a   :  { %v149_v31 = vmul.f32 %v212_v29, %v141_v20 }
 0x24c   :  { %v154_v32 = vmul.f32 %v153_v28, %v149_v31 }
 0x24e   :  { %v159_v33 = vadd.f32 %v158_v30, %v154_v32 }
 0x250   :  { %v160_v34 = vmax.f32 %v159_v33, 0.0 }
 0x252   :  { %v161_v35 = vadd.f32 %v160_v34, %v52_v8 }
 0x254   :  { %162 = vst.msk [vmem:[#allocation8] sm:$0xff] %vm62_vm1, %v161_v35 }
 0x255   :  { %290 = shalt.err (!%p287_p0)
}
 0x256   :  { %s291_s25 = scalar_lea.hbm %s391_s3, 128 }
 0x257   :  { %p292_p1 = scmp.ne.s32.totalorder %s391_s3, %s291_s25  ;;  %p295_p2 = scmp.lt.u32.totalorder %s291_s25, %s391_s3 }
 0x259   :  { %p297_p3 = pnand %p295_p2, %p292_p1 }
 0x25b   :  { %300 = shalt.err (!%p297_p3)
}
 0x25c   :  { %172 = dma.vmem_to_hbm [thread:$0]  %s170_s21, 128, %s391_s3, [#allocation4]  }
 0x25d   :  { %305 = dma.done.wait [#allocation4], 128  }
 0x25e   :  { %306 = vsyncadd [#allocation4], 4294967168 }
 0x25f   :  { %176 = vsyncpa [#allocation3], 1 }
 0x260   :  { %177 = vsyncpa [#allocation6], 1 }
 0x261   :  { %178 = vsyncpa [#allocation4], 1 }

</bundles_post_ra>
